<compile_context>
chip_gen: v7x
topology: tpu7x:2x2x1
jax: 0.10.0
libtpu: 0.0.40
codegen_flags: <defaults>
</compile_context>

<pallas_src>
import jax
import jax.numpy as jnp
from jax.experimental import pallas as pl
from jax.experimental.pallas import tpu as pltpu

BN_EPS = 1e-5


def _round_up(x: int, m: int) -> int:
    return (x + m - 1) // m * m


def _pick_batch_tile(B: int, target: int = 1024):
    """Pad batch only to a multiple of 8 and pick a low-waste tile size."""
    Bp = _round_up(max(B, 1), 8)
    tb = min(target, Bp)
    # largest multiple-of-8 tile <= target whose padding waste is <= ~6%
    while tb > 8 and _round_up(Bp, tb) - Bp > max(Bp // 16, 0):
        tb -= 8
    padded = _round_up(Bp, tb)
    # v7x megacore: prefer >= 2 grid steps once the batch allows it
    if padded // tb < 2 and padded >= 16:
        tb = max(8, _round_up(padded // 2, 8))
        padded = _round_up(Bp, tb)
    return tb, padded


# ----------------------------------------------------------------------------
# Kernel
# ----------------------------------------------------------------------------
def fully_connected_kernel(
    user_ref, out_ref, table_ref,
    w1aa_ref, w1ba_ref, b1a_ref,
    w1ab_ref, w1bb_ref, b1b_ref,
    wla_ref, wlb_ref, bl_ref,
    wma_ref, wmb_ref, bm_ref,
    loc_ref, mode_ref,
):
    # user_ref:  [tb, 1]  int32 user ids
    # out_ref:   [tb, A]  input features (d_input wide, true width)
    # table_ref: [U, E]   user embedding table (resident in VMEM)
    # w1??_ref:  fc_1 weight split by (input segment, output segment); b1?: bias
    # wl?_ref / wm?_ref: fc_loc / fc_mode weights split by input segment,
    #                    BatchNorm (eval) already folded in; bl / bm: biases
    f32 = jnp.float32
    out = out_ref[...]                                  # [tb, A]
    ids = user_ref[...]                                 # [tb, 1] int32

    # In-kernel embedding gather: one-hot @ table (exact; table is tiny and
    # VMEM-resident).  TODO(synk): DMA row-gather path for huge user tables.
    tb = ids.shape[0]
    U = table_ref.shape[0]
    iota = jax.lax.broadcasted_iota(jnp.int32, (tb, U), 1)
    onehot = (iota == ids).astype(f32)                  # [tb, U]
    emb = jnp.dot(onehot, table_ref[...], preferred_element_type=f32)  # [tb, E]

    # Residual block (dropouts are identity in eval mode).  fc_1 is split into
    # four blocks so neither x = [out|emb] nor h ever needs lane concatenation
    # or slicing: za|zb are the first-A / last-E output columns of fc_1.
    za = (jnp.dot(out, w1aa_ref[...], preferred_element_type=f32)
          + jnp.dot(emb, w1ba_ref[...], preferred_element_type=f32)
          + b1a_ref[...])
    zb = (jnp.dot(out, w1ab_ref[...], preferred_element_type=f32)
          + jnp.dot(emb, w1bb_ref[...], preferred_element_type=f32)
          + b1b_ref[...])
    ra = out + jnp.maximum(za, 0.0)                     # residual, segment A
    rb = emb + jnp.maximum(zb, 0.0)                     # residual, segment E

    # Output projections (BatchNorm folded into weights/biases in the wrapper)
    loc_ref[...] = (jnp.dot(ra, wla_ref[...], preferred_element_type=f32)
                    + jnp.dot(rb, wlb_ref[...], preferred_element_type=f32)
                    + bl_ref[...]).astype(loc_ref.dtype)
    mode_ref[...] = (jnp.dot(ra, wma_ref[...], preferred_element_type=f32)
                     + jnp.dot(rb, wmb_ref[...], preferred_element_type=f32)
                     + bm_ref[...]).astype(mode_ref.dtype)


def fully_connected_pallas(user_in, out_in, p, *, tb):
    Bp, A = out_in.shape
    E, F, L, M = p["E"], p["F"], p["L"], p["M"]
    U = p["table"].shape[0]
    assert Bp % tb == 0
    grid = (Bp // tb,)

    def res(shape):  # VMEM-resident (same block every grid step)
        return pl.BlockSpec(shape, lambda i: (0, 0))

    # True-dim cost estimate (helps XLA overlap surrounding work)
    flops = 2 * Bp * (U * E + F * F + F * (L + M))
    bytes_accessed = (
        4 * Bp * (1 + A + L + M)                       # streamed acts + logits
        + 4 * (U * E + F * F + F + F * (L + M) + L + M)  # resident weights
    )

    return pl.pallas_call(
        fully_connected_kernel,
        out_shape=(
            jax.ShapeDtypeStruct((Bp, L), jnp.float32),
            jax.ShapeDtypeStruct((Bp, M), jnp.float32),
        ),
        grid_spec=pltpu.PrefetchScalarGridSpec(
            num_scalar_prefetch=0,
            grid=grid,
            in_specs=[
                pl.BlockSpec((tb, 1), lambda i: (i, 0)),   # user ids (tiled)
                pl.BlockSpec((tb, A), lambda i: (i, 0)),   # out features (tiled)
                res((U, E)),                               # embedding table
                res((A, A)), res((E, A)), res((1, A)),     # fc_1 cols[:A]
                res((A, E)), res((E, E)), res((1, E)),     # fc_1 cols[A:]
                res((A, L)), res((E, L)), res((1, L)),     # fc_loc (BN folded)
                res((A, M)), res((E, M)), res((1, M)),     # fc_mode (BN folded)
            ],
            out_specs=[
                pl.BlockSpec((tb, L), lambda i: (i, 0)),   # loc logits
                pl.BlockSpec((tb, M), lambda i: (i, 0)),   # mode logits
            ],
        ),
        compiler_params=pltpu.CompilerParams(
            dimension_semantics=("parallel",),
        ),
        cost_estimate=pl.CostEstimate(
            flops=flops, transcendentals=0, bytes_accessed=bytes_accessed
        ),
    )(
        user_in, out_in, p["table"],
        p["w1aa"], p["w1ba"], p["b1a"],
        p["w1ab"], p["w1bb"], p["b1b"],
        p["wla"], p["wlb"], p["bl"],
        p["wma"], p["wmb"], p["bm"],
    )


# ----------------------------------------------------------------------------
# One-time parameter preparation (BN folding + weight splitting)
# ----------------------------------------------------------------------------
def prepare_params(params, d_input):
    # NOTE: weights here are in x@W ([in, out]) orientation.  A real PyTorch
    # nn.Linear state_dict stores weight as [out, in] -> transpose when loading.
    F = params["w1"].shape[0]
    A = d_input
    E = F - A
    L = params["w_loc"].shape[1]
    M = params["w_mode"].shape[1]

    # BatchNorm (eval) as affine constants, then fold into output projections:
    #   (r*scale + shift) @ W + b = r @ (scale[:,None]*W) + (shift @ W + b)
    scale = params["bn_gamma"][0] * jax.lax.rsqrt(params["bn_var"][0] + BN_EPS)  # [F]
    shift = params["bn_beta"][0] - params["bn_mean"][0] * scale                   # [F]

    wl = scale[:, None] * params["w_loc"]
    bl = shift[None, :] @ params["w_loc"] + params["b_loc"]
    wm = scale[:, None] * params["w_mode"]
    bm = shift[None, :] @ params["w_mode"] + params["b_mode"]

    w1, b1 = params["w1"], params["b1"]
    return {
        "table": params["emb_user"],
        # fc_1 split into (input segment) x (output segment) blocks
        "w1aa": w1[:A, :A], "w1ba": w1[A:, :A], "b1a": b1[:, :A],
        "w1ab": w1[:A, A:], "w1bb": w1[A:, A:], "b1b": b1[:, A:],
        # output projections split by input segment (BN folded)
        "wla": wl[:A], "wlb": wl[A:], "bl": bl,
        "wma": wm[:A], "wmb": wm[A:], "bm": bm,
        "A": A, "E": E, "F": F, "L": L, "M": M,
    }


# ----------------------------------------------------------------------------
# Full module forward (all hot-path math inside the Pallas kernel)
# ----------------------------------------------------------------------------
def forward(out, user, prep, *, target_tb=1024):
    B, A = out.shape
    assert A == prep["A"]
    tb, Bp = _pick_batch_tile(B, target_tb)

    user2d = user.reshape(B, 1).astype(jnp.int32)
    if Bp > B:  # batch padded only to a multiple of 8 / tile size
        out_in = jnp.pad(out, ((0, Bp - B), (0, 0)))
        user_in = jnp.pad(user2d, ((0, Bp - B), (0, 0)))
    else:
        out_in, user_in = out, user2d

    loc, mode = fully_connected_pallas(user_in, out_in, prep, tb=tb)
    if Bp > B:
        loc, mode = loc[:B], mode[:B]
    return loc, mode


# ----------------------------------------------------------------------------
# Pure-JAX reference (unfused, follows the PyTorch eval-mode math exactly)
# ----------------------------------------------------------------------------
def _reference(out, user, params):
    emb = jnp.take(params["emb_user"], user, axis=0)
    x = jnp.concatenate([out, emb], axis=-1)
    h = jnp.maximum(x @ params["w1"] + params["b1"], 0.0)
    y = x + h
    y = (y - params["bn_mean"]) * jax.lax.rsqrt(params["bn_var"] + BN_EPS) \
        * params["bn_gamma"] + params["bn_beta"]
    return y @ params["w_loc"] + params["b_loc"], y @ params["w_mode"] + params["b_mode"]


if __name__ == "__main__":
    # Small config
    B = 8                 # batch
    D_INPUT = 32          # d_input
    USER_EMB = 16         # config.user_emb_size
    TOTAL_USERS = 10      # config.total_user_num
    TOTAL_LOC = 64        # config.total_loc_num
    FC_DIM = D_INPUT + USER_EMB

    key = jax.random.PRNGKey(0)
    keys = jax.random.split(key, 12)

    params = {
        "emb_user": jax.random.normal(keys[0], (TOTAL_USERS, USER_EMB), jnp.float32) * 0.1,
        "w1":       jax.random.normal(keys[1], (FC_DIM, FC_DIM), jnp.float32) * 0.05,
        "b1":       jax.random.normal(keys[2], (1, FC_DIM), jnp.float32) * 0.01,
        "bn_gamma": 1.0 + 0.1 * jax.random.normal(keys[3], (1, FC_DIM), jnp.float32),
        "bn_beta":  0.1 * jax.random.normal(keys[4], (1, FC_DIM), jnp.float32),
        "bn_mean":  0.05 * jax.random.normal(keys[5], (1, FC_DIM), jnp.float32),
        "bn_var":   1.0 + 0.1 * jnp.abs(jax.random.normal(keys[6], (1, FC_DIM), jnp.float32)),
        "w_loc":    jax.random.normal(keys[7], (FC_DIM, TOTAL_LOC), jnp.float32) * 0.05,
        "b_loc":    jax.random.normal(keys[8], (1, TOTAL_LOC), jnp.float32) * 0.01,
        "w_mode":   jax.random.normal(keys[9], (FC_DIM, 8), jnp.float32) * 0.05,
        "b_mode":   jax.random.normal(keys[10], (1, 8), jnp.float32) * 0.01,
    }

    out_feat = jax.random.normal(keys[11], (B, D_INPUT), jnp.float32)
    user = jax.random.randint(jax.random.PRNGKey(1), (B,), 0, TOTAL_USERS, jnp.int32)

    # One-time BN folding / weight splitting (amortized across calls in practice)
    prepared = prepare_params(params, D_INPUT)
    prepared = jax.tree_util.tree_map(
        lambda v: jax.block_until_ready(v) if isinstance(v, jax.Array) else v, prepared
    )

    loc_logits, mode_logits = forward(out_feat, user, prepared)
    jax.block_until_ready((loc_logits, mode_logits))

    ref_loc, ref_mode = _reference(out_feat, user, params)
    assert loc_logits.shape == (B, TOTAL_LOC) and mode_logits.shape == (B, 8)
    assert jnp.allclose(loc_logits, ref_loc, atol=1e-3, rtol=1e-3)
    assert jnp.allclose(mode_logits, ref_mode, atol=1e-3, rtol=1e-3)

    print("KERNEL_OK")
</pallas_src>

<mosaic_0001>
module attributes {stable_mosaic.version = 11 : i64} {
  func.func @fully_connected_kernel(%arg0: i32, %arg1: memref<8x1xi32, #tpu.memory_space<vmem>>, %arg2: memref<8x32xf32, #tpu.memory_space<vmem>>, %arg3: memref<10x16xf32, #tpu.memory_space<vmem>>, %arg4: memref<32x32xf32, #tpu.memory_space<vmem>>, %arg5: memref<16x32xf32, #tpu.memory_space<vmem>>, %arg6: memref<1x32xf32, #tpu.memory_space<vmem>>, %arg7: memref<32x16xf32, #tpu.memory_space<vmem>>, %arg8: memref<16x16xf32, #tpu.memory_space<vmem>>, %arg9: memref<1x16xf32, #tpu.memory_space<vmem>>, %arg10: memref<32x64xf32, #tpu.memory_space<vmem>>, %arg11: memref<16x64xf32, #tpu.memory_space<vmem>>, %arg12: memref<1x64xf32, #tpu.memory_space<vmem>>, %arg13: memref<32x8xf32, #tpu.memory_space<vmem>>, %arg14: memref<16x8xf32, #tpu.memory_space<vmem>>, %arg15: memref<1x8xf32, #tpu.memory_space<vmem>>, %arg16: memref<8x64xf32, #tpu.memory_space<vmem>>, %arg17: memref<8x8xf32, #tpu.memory_space<vmem>>) attributes {dimension_semantics = [#tpu.dimension_semantics<parallel>], iteration_bounds = array<i64: 1>, scalar_prefetch = 0 : i64, scratch_operands = 0 : i64, tpu.core_type = #tpu.core_type<tc>, window_params = [{transform_indices = @transform_0, window_bounds = array<i64: 8, 1>}, {transform_indices = @transform_1, window_bounds = array<i64: 8, 32>}, {pipeline_mode = #tpu.pipeline_mode<synchronous>, transform_indices = @transform_2, window_bounds = array<i64: 10, 16>}, {pipeline_mode = #tpu.pipeline_mode<synchronous>, transform_indices = @transform_3, window_bounds = array<i64: 32, 32>}, {pipeline_mode = #tpu.pipeline_mode<synchronous>, transform_indices = @transform_4, window_bounds = array<i64: 16, 32>}, {pipeline_mode = #tpu.pipeline_mode<synchronous>, transform_indices = @transform_5, window_bounds = array<i64: 1, 32>}, {pipeline_mode = #tpu.pipeline_mode<synchronous>, transform_indices = @transform_6, window_bounds = array<i64: 32, 16>}, {pipeline_mode = #tpu.pipeline_mode<synchronous>, transform_indices = @transform_7, window_bounds = array<i64: 16, 16>}, {pipeline_mode = #tpu.pipeline_mode<synchronous>, transform_indices = @transform_8, window_bounds = array<i64: 1, 16>}, {pipeline_mode = #tpu.pipeline_mode<synchronous>, transform_indices = @transform_9, window_bounds = array<i64: 32, 64>}, {pipeline_mode = #tpu.pipeline_mode<synchronous>, transform_indices = @transform_10, window_bounds = array<i64: 16, 64>}, {pipeline_mode = #tpu.pipeline_mode<synchronous>, transform_indices = @transform_11, window_bounds = array<i64: 1, 64>}, {pipeline_mode = #tpu.pipeline_mode<synchronous>, transform_indices = @transform_12, window_bounds = array<i64: 32, 8>}, {pipeline_mode = #tpu.pipeline_mode<synchronous>, transform_indices = @transform_13, window_bounds = array<i64: 16, 8>}, {pipeline_mode = #tpu.pipeline_mode<synchronous>, transform_indices = @transform_14, window_bounds = array<i64: 1, 8>}, {transform_indices = @transform_15, window_bounds = array<i64: 8, 64>}, {transform_indices = @transform_16, window_bounds = array<i64: 8, 8>}]} {
    %c0 = arith.constant 0 : index
    %c0_0 = arith.constant 0 : index
    %0 = vector.load %arg2[%c0, %c0_0] : memref<8x32xf32, #tpu.memory_space<vmem>>, vector<8x32xf32>
    %c0_1 = arith.constant 0 : index
    %c0_2 = arith.constant 0 : index
    %1 = vector.load %arg1[%c0_1, %c0_2] : memref<8x1xi32, #tpu.memory_space<vmem>>, vector<8x1xi32>
    %2 = tpu.iota {dimensions = array<i32: 1>} : vector<8x10xi32>
    %3 = vector.broadcast %1 : vector<8x1xi32> to vector<8x10xi32>
    %4 = arith.cmpi eq, %2, %3 : vector<8x10xi32>
    %5 = arith.extui %4 : vector<8x10xi1> to vector<8x10xi32>
    %6 = arith.sitofp %5 : vector<8x10xi32> to vector<8x10xf32>
    %c0_3 = arith.constant 0 : index
    %c0_4 = arith.constant 0 : index
    %7 = vector.load %arg3[%c0_3, %c0_4] : memref<10x16xf32, #tpu.memory_space<vmem>>, vector<10x16xf32>
    %cst = arith.constant dense<0.000000e+00> : vector<8x16xf32>
    %8 = tpu.matmul %6, %7, %cst {dimension_numbers = #tpu.dot_dimension_numbers<[1], [0], [0], [1], [0, 0, 1, 1], [], []>} : vector<8x10xf32>, vector<10x16xf32>, vector<8x16xf32> -> vector<8x16xf32>
    %c0_5 = arith.constant 0 : index
    %c0_6 = arith.constant 0 : index
    %9 = vector.load %arg4[%c0_5, %c0_6] : memref<32x32xf32, #tpu.memory_space<vmem>>, vector<32x32xf32>
    %cst_7 = arith.constant dense<0.000000e+00> : vector<8x32xf32>
    %10 = tpu.matmul %0, %9, %cst_7 {dimension_numbers = #tpu.dot_dimension_numbers<[1], [0], [0], [1], [0, 0, 1, 1], [], []>} : vector<8x32xf32>, vector<32x32xf32>, vector<8x32xf32> -> vector<8x32xf32>
    %c0_8 = arith.constant 0 : index
    %c0_9 = arith.constant 0 : index
    %11 = vector.load %arg5[%c0_8, %c0_9] : memref<16x32xf32, #tpu.memory_space<vmem>>, vector<16x32xf32>
    %cst_10 = arith.constant dense<0.000000e+00> : vector<8x32xf32>
    %12 = tpu.matmul %8, %11, %cst_10 {dimension_numbers = #tpu.dot_dimension_numbers<[1], [0], [0], [1], [0, 0, 1, 1], [], []>} : vector<8x16xf32>, vector<16x32xf32>, vector<8x32xf32> -> vector<8x32xf32>
    %13 = arith.addf %10, %12 : vector<8x32xf32>
    %c0_11 = arith.constant 0 : index
    %c0_12 = arith.constant 0 : index
    %14 = vector.load %arg6[%c0_11, %c0_12] : memref<1x32xf32, #tpu.memory_space<vmem>>, vector<1x32xf32>
    %15 = vector.broadcast %14 : vector<1x32xf32> to vector<8x32xf32>
    %16 = arith.addf %13, %15 : vector<8x32xf32>
    %c0_13 = arith.constant 0 : index
    %c0_14 = arith.constant 0 : index
    %17 = vector.load %arg7[%c0_13, %c0_14] : memref<32x16xf32, #tpu.memory_space<vmem>>, vector<32x16xf32>
    %cst_15 = arith.constant dense<0.000000e+00> : vector<8x16xf32>
    %18 = tpu.matmul %0, %17, %cst_15 {dimension_numbers = #tpu.dot_dimension_numbers<[1], [0], [0], [1], [0, 0, 1, 1], [], []>} : vector<8x32xf32>, vector<32x16xf32>, vector<8x16xf32> -> vector<8x16xf32>
    %c0_16 = arith.constant 0 : index
    %c0_17 = arith.constant 0 : index
    %19 = vector.load %arg8[%c0_16, %c0_17] : memref<16x16xf32, #tpu.memory_space<vmem>>, vector<16x16xf32>
    %cst_18 = arith.constant dense<0.000000e+00> : vector<8x16xf32>
    %20 = tpu.matmul %8, %19, %cst_18 {dimension_numbers = #tpu.dot_dimension_numbers<[1], [0], [0], [1], [0, 0, 1, 1], [], []>} : vector<8x16xf32>, vector<16x16xf32>, vector<8x16xf32> -> vector<8x16xf32>
    %21 = arith.addf %18, %20 : vector<8x16xf32>
    %c0_19 = arith.constant 0 : index
    %c0_20 = arith.constant 0 : index
    %22 = vector.load %arg9[%c0_19, %c0_20] : memref<1x16xf32, #tpu.memory_space<vmem>>, vector<1x16xf32>
    %23 = vector.broadcast %22 : vector<1x16xf32> to vector<8x16xf32>
    %24 = arith.addf %21, %23 : vector<8x16xf32>
    %cst_21 = arith.constant 0.000000e+00 : f32
    %25 = vector.broadcast %cst_21 : f32 to vector<8x32xf32>
    %26 = arith.maximumf %16, %25 : vector<8x32xf32>
    %27 = arith.addf %0, %26 : vector<8x32xf32>
    %cst_22 = arith.constant 0.000000e+00 : f32
    %28 = vector.broadcast %cst_22 : f32 to vector<8x16xf32>
    %29 = arith.maximumf %24, %28 : vector<8x16xf32>
    %30 = arith.addf %8, %29 : vector<8x16xf32>
    %c0_23 = arith.constant 0 : index
    %c0_24 = arith.constant 0 : index
    %31 = vector.load %arg10[%c0_23, %c0_24] : memref<32x64xf32, #tpu.memory_space<vmem>>, vector<32x64xf32>
    %cst_25 = arith.constant dense<0.000000e+00> : vector<8x64xf32>
    %32 = tpu.matmul %27, %31, %cst_25 {dimension_numbers = #tpu.dot_dimension_numbers<[1], [0], [0], [1], [0, 0, 1, 1], [], []>} : vector<8x32xf32>, vector<32x64xf32>, vector<8x64xf32> -> vector<8x64xf32>
    %c0_26 = arith.constant 0 : index
    %c0_27 = arith.constant 0 : index
    %33 = vector.load %arg11[%c0_26, %c0_27] : memref<16x64xf32, #tpu.memory_space<vmem>>, vector<16x64xf32>
    %cst_28 = arith.constant dense<0.000000e+00> : vector<8x64xf32>
    %34 = tpu.matmul %30, %33, %cst_28 {dimension_numbers = #tpu.dot_dimension_numbers<[1], [0], [0], [1], [0, 0, 1, 1], [], []>} : vector<8x16xf32>, vector<16x64xf32>, vector<8x64xf32> -> vector<8x64xf32>
    %35 = arith.addf %32, %34 : vector<8x64xf32>
    %c0_29 = arith.constant 0 : index
    %c0_30 = arith.constant 0 : index
    %36 = vector.load %arg12[%c0_29, %c0_30] : memref<1x64xf32, #tpu.memory_space<vmem>>, vector<1x64xf32>
    %37 = vector.broadcast %36 : vector<1x64xf32> to vector<8x64xf32>
    %38 = arith.addf %35, %37 : vector<8x64xf32>
    %c0_31 = arith.constant 0 : index
    %c0_32 = arith.constant 0 : index
    %39 = vector.load %arg16[%c0_31, %c0_32] : memref<8x64xf32, #tpu.memory_space<vmem>>, vector<8x64xf32>
    tpu.vector_store %arg16[%c0_31, %c0_32], %38 {strides = array<i32>} : memref<8x64xf32, #tpu.memory_space<vmem>>, vector<8x64xf32>,
    %c0_33 = arith.constant 0 : index
    %c0_34 = arith.constant 0 : index
    %40 = vector.load %arg13[%c0_33, %c0_34] : memref<32x8xf32, #tpu.memory_space<vmem>>, vector<32x8xf32>
    %cst_35 = arith.constant dense<0.000000e+00> : vector<8x8xf32>
    %41 = tpu.matmul %27, %40, %cst_35 {dimension_numbers = #tpu.dot_dimension_numbers<[1], [0], [0], [1], [0, 0, 1, 1], [], []>} : vector<8x32xf32>, vector<32x8xf32>, vector<8x8xf32> -> vector<8x8xf32>
    %c0_36 = arith.constant 0 : index
    %c0_37 = arith.constant 0 : index
    %42 = vector.load %arg14[%c0_36, %c0_37] : memref<16x8xf32, #tpu.memory_space<vmem>>, vector<16x8xf32>
    %cst_38 = arith.constant dense<0.000000e+00> : vector<8x8xf32>
    %43 = tpu.matmul %30, %42, %cst_38 {dimension_numbers = #tpu.dot_dimension_numbers<[1], [0], [0], [1], [0, 0, 1, 1], [], []>} : vector<8x16xf32>, vector<16x8xf32>, vector<8x8xf32> -> vector<8x8xf32>
    %44 = arith.addf %41, %43 : vector<8x8xf32>
    %c0_39 = arith.constant 0 : index
    %c0_40 = arith.constant 0 : index
    %45 = vector.load %arg15[%c0_39, %c0_40] : memref<1x8xf32, #tpu.memory_space<vmem>>, vector<1x8xf32>
    %46 = vector.broadcast %45 : vector<1x8xf32> to vector<8x8xf32>
    %47 = arith.addf %44, %46 : vector<8x8xf32>
    %c0_41 = arith.constant 0 : index
    %c0_42 = arith.constant 0 : index
    %48 = vector.load %arg17[%c0_41, %c0_42] : memref<8x8xf32, #tpu.memory_space<vmem>>, vector<8x8xf32>
    tpu.vector_store %arg17[%c0_41, %c0_42], %47 {strides = array<i32>} : memref<8x8xf32, #tpu.memory_space<vmem>>, vector<8x8xf32>,
    return
  }
  func.func @transform_0(%arg0: i32) -> (i32, i32) {
    %c0_i32 = arith.constant 0 : i32
    %c0_i32_0 = arith.constant 0 : i32
    return %arg0, %c0_i32 : i32, i32
  }
  func.func @transform_1(%arg0: i32) -> (i32, i32) {
    %c0_i32 = arith.constant 0 : i32
    %c0_i32_0 = arith.constant 0 : i32
    return %arg0, %c0_i32 : i32, i32
  }
  func.func @transform_2(%arg0: i32) -> (i32, i32) {
    %c0_i32 = arith.constant 0 : i32
    %c0_i32_0 = arith.constant 0 : i32
    %c0_i32_1 = arith.constant 0 : i32
    return %c0_i32, %c0_i32_0 : i32, i32
  }
  func.func @transform_3(%arg0: i32) -> (i32, i32) {
    %c0_i32 = arith.constant 0 : i32
    %c0_i32_0 = arith.constant 0 : i32
    %c0_i32_1 = arith.constant 0 : i32
    return %c0_i32, %c0_i32_0 : i32, i32
  }
  func.func @transform_4(%arg0: i32) -> (i32, i32) {
    %c0_i32 = arith.constant 0 : i32
    %c0_i32_0 = arith.constant 0 : i32
    %c0_i32_1 = arith.constant 0 : i32
    return %c0_i32, %c0_i32_0 : i32, i32
  }
  func.func @transform_5(%arg0: i32) -> (i32, i32) {
    %c0_i32 = arith.constant 0 : i32
    %c0_i32_0 = arith.constant 0 : i32
    %c0_i32_1 = arith.constant 0 : i32
    return %c0_i32, %c0_i32_0 : i32, i32
  }
  func.func @transform_6(%arg0: i32) -> (i32, i32) {
    %c0_i32 = arith.constant 0 : i32
    %c0_i32_0 = arith.constant 0 : i32
    %c0_i32_1 = arith.constant 0 : i32
    return %c0_i32, %c0_i32_0 : i32, i32
  }
  func.func @transform_7(%arg0: i32) -> (i32, i32) {
    %c0_i32 = arith.constant 0 : i32
    %c0_i32_0 = arith.constant 0 : i32
    %c0_i32_1 = arith.constant 0 : i32
    return %c0_i32, %c0_i32_0 : i32, i32
  }
  func.func @transform_8(%arg0: i32) -> (i32, i32) {
    %c0_i32 = arith.constant 0 : i32
    %c0_i32_0 = arith.constant 0 : i32
    %c0_i32_1 = arith.constant 0 : i32
    return %c0_i32, %c0_i32_0 : i32, i32
  }
  func.func @transform_9(%arg0: i32) -> (i32, i32) {
    %c0_i32 = arith.constant 0 : i32
    %c0_i32_0 = arith.constant 0 : i32
    %c0_i32_1 = arith.constant 0 : i32
    return %c0_i32, %c0_i32_0 : i32, i32
  }
  func.func @transform_10(%arg0: i32) -> (i32, i32) {
    %c0_i32 = arith.constant 0 : i32
    %c0_i32_0 = arith.constant 0 : i32
    %c0_i32_1 = arith.constant 0 : i32
    return %c0_i32, %c0_i32_0 : i32, i32
  }
  func.func @transform_11(%arg0: i32) -> (i32, i32) {
    %c0_i32 = arith.constant 0 : i32
    %c0_i32_0 = arith.constant 0 : i32
    %c0_i32_1 = arith.constant 0 : i32
    return %c0_i32, %c0_i32_0 : i32, i32
  }
  func.func @transform_12(%arg0: i32) -> (i32, i32) {
    %c0_i32 = arith.constant 0 : i32
    %c0_i32_0 = arith.constant 0 : i32
    %c0_i32_1 = arith.constant 0 : i32
    return %c0_i32, %c0_i32_0 : i32, i32
  }
  func.func @transform_13(%arg0: i32) -> (i32, i32) {
    %c0_i32 = arith.constant 0 : i32
    %c0_i32_0 = arith.constant 0 : i32
    %c0_i32_1 = arith.constant 0 : i32
    return %c0_i32, %c0_i32_0 : i32, i32
  }
  func.func @transform_14(%arg0: i32) -> (i32, i32) {
    %c0_i32 = arith.constant 0 : i32
    %c0_i32_0 = arith.constant 0 : i32
    %c0_i32_1 = arith.constant 0 : i32
    return %c0_i32, %c0_i32_0 : i32, i32
  }
  func.func @transform_15(%arg0: i32) -> (i32, i32) {
    %c0_i32 = arith.constant 0 : i32
    %c0_i32_0 = arith.constant 0 : i32
    return %arg0, %c0_i32 : i32, i32
  }
  func.func @transform_16(%arg0: i32) -> (i32, i32) {
    %c0_i32 = arith.constant 0 : i32
    %c0_i32_0 = arith.constant 0 : i32
    return %arg0, %c0_i32 : i32, i32
  }
}

</mosaic_0001>

<bundles_post_ra>
// kernel: tpu_custom_call.1
= control target key start
LH: loop header
LB: loop body
LE: loop exit
PB: predicated region body
PF: predicated region fallthrough
CT: control target
= control target key end

     0   :  { %s1340_s0 = inlined_call_operand.vmem [shape: s32[8,1], index: 0, kind: input, shape index: {}]   ;;  %s1341_s1 = inlined_call_operand.hbm [shape: f32[8,32], index: 1, kind: input, shape index: {}]   ;;  %s1342_s2 = inlined_call_operand.vmem [shape: f32[10,16], index: 2, kind: input, shape index: {}]   ;;  %s1343_s3 = inlined_call_operand.vmem [shape: f32[32,32], index: 3, kind: input, shape index: {}]   ;;  %s1344_s4 = inlined_call_operand.vmem [shape: f32[16,32], index: 4, kind: input, shape index: {}]   ;;  %s1345_s5 = inlined_call_operand.vmem [shape: f32[1,32], index: 5, kind: input, shape index: {}]   ;;  %s1346_s6 = inlined_call_operand.vmem [shape: f32[32,16], index: 6, kind: input, shape index: {}]   ;;  %s1347_s7 = inlined_call_operand.vmem [shape: f32[16,16], index: 7, kind: input, shape index: {}]   ;;  %s1348_s8 = inlined_call_operand.vmem [shape: f32[1,16], index: 8, kind: input, shape index: {}]   ;;  %s1349_s9 = inlined_call_operand.vmem [shape: f32[32,64], index: 9, kind: input, shape index: {}]   ;;  %s1350_s10 = inlined_call_operand.vmem [shape: f32[16,64], index: 10, kind: input, shape index: {}]   ;;  %s1351_s11 = inlined_call_operand.vmem [shape: f32[1,64], index: 11, kind: input, shape index: {}]   ;;  %s1352_s12 = inlined_call_operand.vmem [shape: f32[32,8], index: 12, kind: input, shape index: {}]   ;;  %s1353_s13 = inlined_call_operand.vmem [shape: f32[16,8], index: 13, kind: input, shape index: {}]   ;;  %s1354_s14 = inlined_call_operand.vmem [shape: f32[1,8], index: 14, kind: input, shape index: {}]   ;;  %s1355_s15 = inlined_call_operand.hbm [shape: f32[8,64], index: 15, kind: output, shape index: {0}]   ;;  %s1356_s16 = inlined_call_operand.hbm [shape: f32[8,8], index: 16, kind: output, shape index: {1}]  }
   0x1   :  { %1357 = sst [smem:[#allocation11_spill]] %s1340_s0 }
   0x2   :  { %22 = vsyncpa [#allocation3], 0 }
   0x3   :  { %23 = vsyncpa [#allocation4], 0 }
   0x4   :  { %24 = vsyncpa [#allocation7], 0  ;;  %s1073_s21 = smov [#allocation2]   ;;  %s1001_s25 = scalar_lea.hbm %s1341_s1, 128 }
   0x5   :  { %s33_s22 = sshll.u32 %s1073_s21, 4  ;;  %p1002_p0 = scmp.ne.s32.totalorder %s1341_s1, %s1001_s25  ;;  %s34_s22 = int_to_ptr.vmem [resolvable:$true] %s33_s22 }
   0x6   :  { %p1005_p1 = scmp.lt.u32.totalorder %s1001_s25, %s1341_s1 }
   0x8   :  { %p1007_p2 = pnand %p1005_p1, %p1002_p0 }
   0xa   :  { %1010 = shalt.err (!%p1007_p2)
}
   0xb   :  { %s1011_s30 = scalar_lea.vmem %s34_s22, 128  ;;  %p1016_p4 = scmp.lt.s32.totalorder %s34_s22, %s34_s22 }
   0xc   :  { %p1012_p3 = scmp.ne.s32.totalorder %s34_s22, %s1011_s30  ;;  %p1017_p5 = scmp.lt.s32.totalorder %s1011_s30, %s1011_s30 }
   0xe   :  { %p1018_p6 = por %p1017_p5, %p1016_p4 }
  0x10   :  { %p1019_p7 = pnand %p1018_p6, %p1012_p3 }
  0x12   :  { %1022 = shalt.err (!%p1019_p7)
}
  0x13   :  { %36 = dma.hbm_to_vmem [thread:$0]  %s1341_s1, 128, %s34_s22, [#allocation3]  }
  0x14   :  { %1067 = dma.done.wait [#allocation3], 128  }
  0x15   :  { %1068 = vsyncadd [#allocation3], 4294967168  ;;  %v1074_v0 = vmov 0   ;;  %v1075_v1 = vmov 0.0|0.0   ;;  %vm82_vm0 = vcmask 1041408   ;;  %vm1076_vm1 = vmmov 1  }
  0x16   :  { %1000 = vset.pattern.permute.xlu0 %v1074_v0  ;;  %952 = vmatprep.subr.bf16.mxu0 %v1075_v1  ;;  %vm954_vm2 = vmpackc.low %vm82_vm0, %vm1076_vm1  ;;  %s1358_s20 = sld [smem:[#allocation11_spill]]  ;;  %v76_v3 = vld [vmem:[%s1342_s2] sm:$0xff]  ;;  %v77_v4 = vld [vmem:[%s1342_s2 + $0x8] sm:$0x3]  ;;  %vm1077_vm3 = vmmov 0   ;;  %v1078_v6 = vmov 0.0   ;;  %v68_v10 = vlaneseq }
  0x17   :  { %956 = vmatprep.subr.bf16.mxu1 %v1075_v1  ;;  %v953_v5 = vpack.c.bf16 %v77_v4, %v76_v3  ;;  %877 = vmatprep.mubr.msk.f32.mxu0 %vm1077_vm3, %v1078_v6  ;;  %v160_v7 = vld [vmem:[%s1344_s4] sm:$0xff]  ;;  %v161_v8 = vld [vmem:[%s1344_s4 + $0x8] sm:$0xff]  ;;  %vm78_vm4 = vcmask 80896   ;;  %v158_v16 = vld [vmem:[%s1343_s3 + $0x10] sm:$0xff]  ;;  %vm236_vm6 = vcmask 261120   ;;  %vm162_vm7 = vcmask 130048  }
  0x18   :  { %884 = vmatprep.mubr.msk.f32.mxu1 %vm1077_vm3, %v1078_v6  ;;  %v957_v9 = vpack.c.bf16 %v161_v8, %v160_v7  ;;  %v69_v11 = vand.u32 127, %v68_v10  ;;  %v156_v12 = vld [vmem:[%s1343_s3] sm:$0xff]  ;;  %v157_v13 = vld [vmem:[%s1343_s3 + $0x8] sm:$0xff]  ;;  %v159_v17 = vld [vmem:[%s1343_s3 + $0x18] sm:$0xff]  ;;  %s1079_s0 = smov [#allocation5]   ;;  %s1080_s17 = smov [#allocation6]  }
  0x19   :  { %955 = vmatpush3.bf16.msk.msra.mxu0 %vm954_vm2, %v953_v5  ;;  %v960_v15 = vpack.c.bf16 %v157_v13, %v156_v12  ;;  %v963_v19 = vpack.c.bf16 %v159_v17, %v158_v16  ;;  %v1218_v20 = vld [vmem:[#allocation2] sm:$0xff]  ;;  %v323_v22 = vld [vmem:[%s1347_s7 + $0x8] sm:$0xff]  ;;  %v320_v29 = vld [vmem:[%s1346_s6 + $0x10] sm:$0xff]  ;;  %s800_s4 = sshll.u32 %s1079_s0, 4  ;;  %vm636_vm8 = vcmask 523264   ;;  %vm792_vm9 = vcmask 64512   ;;  %s801_s4 = int_to_ptr.vmem [resolvable:$true] %s800_s4 }
  0x1a   :  { %959 = vmatprep.subr.bf16.mxu0 %v1075_v1  ;;  %958 = vmatpush3.bf16.msra.mxu1 %v957_v9  ;;  %v322_v21 = vld [vmem:[%s1347_s7] sm:$0xff]  ;;  %v319_v25 = vld [vmem:[%s1346_s6 + $0x8] sm:$0xff]  ;;  %v321_v30 = vld [vmem:[%s1346_s6 + $0x18] sm:$0xff]  ;;  %p1028_p9 = scmp.lt.s32.totalorder %s801_s4, %s801_s4 }
  0x1b   :  { %965 = vmatprep.subr.bf16.mxu1 %v1075_v1  ;;  %v966_v23 = vpack.c.bf16 %v323_v22, %v322_v21  ;;  %v318_v24 = vld [vmem:[%s1346_s6] sm:$0xff]  ;;  %v972_v31 = vpack.c.bf16 %v321_v30, %v320_v29  ;;  %v481_v35 = vld [vmem:[%s1350_s10 + $0x8] sm:$0xff]  ;;  %v478_v58 = vld [vmem:[%s1349_s9 + $0x10] sm:$0xff] }
  0x1c   :  { %v67_v2 = vld [vmem:[%s1358_s20] sm:$0xff]  ;;  %v969_v28 = vpack.c.bf16 %v319_v25, %v318_v24  ;;  %v643_v38 = vld [vmem:[%s1353_s13 + $0x8] sm:$0xff]  ;;  %v479_v61 = vld [vmem:[%s1349_s9 + $0x18] sm:$0xff] }
  0x1d   :  { %71 = vperm.xlu0 %1000, %v67_v2   ;;  %v480_v34 = vld [vmem:[%s1350_s10] sm:$0xff]  ;;  %v477_v51 = vld [vmem:[%s1349_s9 + $0x8] sm:$0xff]  ;;  %v640_v62 = vld [vmem:[%s1352_s12 + $0x10] sm:$0xff]  ;;  %v981_v0 = vpack.c.bf16 %v479_v61, %v478_v58  ;;  %s810_s10 = sshll.u32 %s1080_s17, 4  ;;  %s811_s10 = int_to_ptr.vmem [resolvable:$true] %s810_s10 }
  0x1e   :  { %v642_v36 = vld [vmem:[%s1353_s13] sm:$0xff]  ;;  %v975_v37 = vpack.c.bf16 %v481_v35, %v480_v34  ;;  %v639_v53 = vld [vmem:[%s1352_s12 + $0x8] sm:$0xff]  ;;  %v641_v63 = vld [vmem:[%s1352_s12 + $0x18] sm:$0xff] }
  0x1f   :  { %v984_v39 = vpack.c.bf16 %v643_v38, %v642_v36  ;;  %v831_v46 = vld [vmem:[%s1348_s8] ss:$0 sm:$0xff]  ;;  %v990_v2 = vpack.c.bf16 %v641_v63, %v640_v62 }
  0x20   :  { %v476_v49 = vld [vmem:[%s1349_s9] sm:$0xff] }
  0x21   :  { %v638_v52 = vld [vmem:[%s1352_s12] sm:$0xff]  ;;  %v978_v56 = vpack.c.bf16 %v477_v51, %v476_v49 }
  0x22   :  { %v828_v54 = vld [vmem:[%s1345_s5] ss:$0 sm:$0xff]  ;;  %v987_v57 = vpack.c.bf16 %v639_v53, %v638_v52 }
  0x9c   :  { %v72_v14 = vpop.permute.xlu0 %71 }
  0x9d   :  { %vm73_vm5 = vcmp.eq.s32.totalorder %v69_v11, %v72_v14 }
  0x9e   :  { %v823_v18 = vsel %vm73_vm5, 1.0, %v1078_v6 }
  0x9f   :  { %878 = vmatmul.mubr.msk.f32.vlgmr.msra.gmra.mrb[0].mxu0 %vm78_vm4, %v823_v18 }
  0xa0   :  { %961 = vmatpush3.bf16.msra.mxu0 %v960_v15  ;;  %895 = vmatprep.mubr.msk.f32.mxu0 %vm1077_vm3, %v1078_v6 }
  0xa1   :  { %962 = vmatprep.subr.bf16.mxu0 %v1075_v1 }
  0xa4   :  { %964 = vmatpush3.bf16.msra.mxu0 %v963_v19 }
  0xa5   :  { %974 = vmatprep.subr.bf16.mxu0 %v1075_v1 }
  0xa7   :  { %896 = vmatmul.mubr.msk.f32.vlgmr.msra.gmra.mrb[2].mxu0 %vm236_vm6, %v1218_v20 }
  0xa8   :  { %920 = vmatprep.mubr.msk.f32.mxu0 %vm1077_vm3, %v1078_v6  ;;  %976 = vmatpush3.bf16.msra.mxu0 %v975_v37 }
  0xa9   :  { %977 = vmatprep.subr.bf16.mxu0 %v1075_v1 }
 0x172   :  { %v152_v26 = vpop.f32.mrb[0].mxu0 }
 0x173   :  { %v879_v27 = vpop.f32.mrb[1].mxu0  ;;  %885 = vmatmul.mubr.msk.f32.vlgmr.msra.gmra.mrb[0].mxu1 %vm162_vm7, %v152_v26 }
 0x174   :  { %967 = vmatpush3.bf16.msra.mxu1 %v966_v23  ;;  %902 = vmatprep.mubr.msk.f32.mxu1 %vm1077_vm3, %v1078_v6 }
 0x175   :  { %968 = vmatprep.subr.bf16.mxu1 %v1075_v1 }
 0x177   :  { %903 = vmatmul.mubr.msk.f32.vlgmr.msra.gmra.mrb[2].mxu1 %vm162_vm7, %v152_v26 }
 0x178   :  { %970 = vmatpush3.bf16.msra.mxu1 %v969_v28  ;;  %913 = vmatprep.mubr.msk.f32.mxu1 %vm1077_vm3, %v1078_v6 }
 0x179   :  { %971 = vmatprep.subr.bf16.mxu1 %v1075_v1 }
 0x17a   :  { %v306_v32 = vpop.f32.mrb[2].mxu0 }
 0x17b   :  { %v897_v33 = vpop.f32.mrb[3].mxu0 }
 0x17c   :  { %973 = vmatpush3.bf16.msra.mxu1 %v972_v31 }
 0x17d   :  { %983 = vmatprep.subr.bf16.mxu1 %v1075_v1 }
 0x17f   :  { %914 = vmatmul.mubr.msk.f32.vlgmr.msra.gmra.mrb[4].mxu1 %vm236_vm6, %v1218_v20 }
 0x180   :  { %938 = vmatprep.mubr.msk.f32.mxu1 %vm1077_vm3, %v1078_v6  ;;  %985 = vmatpush3.bf16.msra.mxu1 %v984_v39 }
 0x181   :  { %986 = vmatprep.subr.bf16.mxu1 %v1075_v1 }
 0x246   :  { %v232_v40 = vpop.f32.mrb[0].mxu1 }
 0x247   :  { %v307_v41 = vadd.f32 %v306_v32, %v232_v40  ;;  %v886_v42 = vpop.f32.mrb[1].mxu1 }
 0x249   :  { %v317_v59 = vadd.f32 %v828_v54, %v307_v41 }
 0x24a   :  { %v390_v43 = vpop.f32.mrb[2].mxu1 }
 0x24b   :  { %v904_v44 = vpop.f32.mrb[3].mxu1  ;;  %v472_v3 = vmax.f32 %v317_v59, 0.0 }
 0x24d   :  { %v473_v4 = vadd.f32 %v472_v3, %v1218_v20 }
 0x252   :  { %v460_v45 = vpop.f32.mrb[4].mxu1 }
 0x253   :  { %v461_v47 = vadd.f32 %v460_v45, %v390_v43  ;;  %v915_v48 = vpop.f32.mrb[5].mxu1 }
 0x255   :  { %v471_v50 = vadd.f32 %v831_v46, %v461_v47 }
 0x257   :  { %v474_v55 = vmax.f32 %v471_v50, 0.0 }
 0x259   :  { %v475_v60 = vadd.f32 %v474_v55, %v152_v26 }
 0x25b   :  { %921 = vmatmul.mubr.msk.f32.vlgmr.msra.gmra.mrb[4].mxu0 %vm162_vm7, %v475_v60  ;;  %939 = vmatmul.mubr.msk.f32.vlgmr.msra.gmra.mrb[6].mxu1 %vm162_vm7, %v475_v60 }
 0x25c   :  { %979 = vmatpush3.bf16.msra.mxu0 %v978_v56  ;;  %988 = vmatpush3.bf16.msra.mxu1 %v987_v57 }
 0x25d   :  { %980 = vmatprep.subr.bf16.mxu0 %v1075_v1  ;;  %989 = vmatprep.subr.bf16.mxu1 %v1075_v1  ;;  %v834_v1 = vld [vmem:[%s1351_s11] ss:$0 sm:$0xff]  ;;  %s1023_s11 = scalar_lea.vmem %s801_s4, 128 }
 0x25e   :  { %931 = vmatprep.mubr.msk.f32.mxu0 %vm1077_vm3, %v1078_v6  ;;  %949 = vmatprep.mubr.msk.f32.mxu1 %vm1077_vm3, %v1078_v6  ;;  %v837_v6 = vld [vmem:[%s1354_s14] ss:$0 sm:$0xff]  ;;  %p1024_p8 = scmp.ne.s32.totalorder %s801_s4, %s1023_s11  ;;  %p1029_p10 = scmp.lt.s32.totalorder %s1023_s11, %s1023_s11 }
 0x260   :  { %982 = vmatpush3.bf16.msra.mxu0 %v981_v0  ;;  %991 = vmatpush3.bf16.msra.mxu1 %v990_v2  ;;  %p1030_p11 = por %p1029_p10, %p1028_p9 }
 0x262   :  { %p1031_p12 = pnand %p1030_p11, %p1024_p8 }
 0x263   :  { %932 = vmatmul.mubr.msk.f32.vlgmr.msra.gmra.mrb[6].mxu0 %vm236_vm6, %v473_v4  ;;  %950 = vmatmul.mubr.msk.f32.vlgmr.msra.gmra.mrb[8].mxu1 %vm236_vm6, %v473_v4 }
 0x32e   :  { %v551_v5 = vpop.f32.mrb[4].mxu0  ;;  %v710_v7 = vpop.f32.mrb[6].mxu1 }
 0x32f   :  { %v922_v8 = vpop.f32.mrb[5].mxu0  ;;  %v940_v9 = vpop.f32.mrb[7].mxu1 }
 0x336   :  { %v624_v10 = vpop.f32.mrb[6].mxu0  ;;  %v780_v11 = vpop.f32.mrb[8].mxu1 }
 0x337   :  { %v625_v12 = vadd.f32 %v624_v10, %v551_v5  ;;  %v781_v13 = vadd.f32 %v780_v11, %v710_v7  ;;  %v933_v14 = vpop.f32.mrb[7].mxu0  ;;  %v951_v15 = vpop.f32.mrb[9].mxu1 }
 0x339   :  { %v635_v16 = vadd.f32 %v834_v1, %v625_v12  ;;  %v791_v17 = vadd.f32 %v837_v6, %v781_v13 }
 0x33b   :  { %637 = vst.msk [vmem:[#allocation5] sm:$0xff] %vm636_vm8, %v635_v16 }
 0x33c   :  { %793 = vst.msk [vmem:[#allocation6] sm:$0xff] %vm792_vm9, %v791_v17 }
 0x33d   :  { %1034 = shalt.err (!%p1031_p12)
}
 0x33e   :  { %s1035_s13 = scalar_lea.hbm %s1355_s15, 128 }
 0x33f   :  { %p1036_p13 = scmp.ne.s32.totalorder %s1355_s15, %s1035_s13  ;;  %p1039_p0 = scmp.lt.u32.totalorder %s1035_s13, %s1355_s15 }
 0x341   :  { %p1041_p1 = pnand %p1039_p0, %p1036_p13 }
 0x343   :  { %1044 = shalt.err (!%p1041_p1)
}
 0x344   :  { %803 = dma.vmem_to_hbm [thread:$0]  %s801_s4, 128, %s1355_s15, [#allocation4]  }
 0x345   :  { %s1045_s22 = scalar_lea.vmem %s811_s10, 128  ;;  %p1050_p3 = scmp.lt.s32.totalorder %s811_s10, %s811_s10 }
 0x346   :  { %p1046_p2 = scmp.ne.s32.totalorder %s811_s10, %s1045_s22  ;;  %p1051_p4 = scmp.lt.s32.totalorder %s1045_s22, %s1045_s22 }
 0x348   :  { %p1052_p5 = por %p1051_p4, %p1050_p3 }
 0x34a   :  { %p1053_p6 = pnand %p1052_p5, %p1046_p2 }
 0x34c   :  { %1056 = shalt.err (!%p1053_p6)
}
 0x34d   :  { %s1057_s7 = scalar_lea.hbm %s1356_s16, 128 }
 0x34e   :  { %p1058_p7 = scmp.ne.s32.totalorder %s1356_s16, %s1057_s7  ;;  %p1061_p8 = scmp.lt.u32.totalorder %s1057_s7, %s1356_s16 }
 0x350   :  { %p1063_p9 = pnand %p1061_p8, %p1058_p7 }
 0x352   :  { %1066 = shalt.err (!%p1063_p9)
}
 0x353   :  { %813 = dma.vmem_to_hbm [thread:$0]  %s811_s10, 128, %s1356_s16, [#allocation7]  }
 0x354   :  { %1069 = dma.done.wait [#allocation4], 128  }
 0x355   :  { %1070 = vsyncadd [#allocation4], 4294967168 }
 0x356   :  { %1071 = dma.done.wait [#allocation7], 128  }
 0x357   :  { %1072 = vsyncadd [#allocation7], 4294967168 }
 0x358   :  { %820 = vsyncpa [#allocation3], 1 }
 0x359   :  { %821 = vsyncpa [#allocation4], 1 }
 0x35a   :  { %822 = vsyncpa [#allocation7], 1 }

</bundles_post_ra>
